<compile_context>
chip_gen: v6e
topology: v6e:2x2x1
jax: 0.10.0
libtpu: 0.0.40
codegen_flags: <defaults>
</compile_context>

<pallas_src>
import jax
import jax.numpy as jnp
from jax.experimental import pallas as pl
from jax.experimental.pallas import tpu as pltpu


_LANES = 128
_TARGET_TILE_F32_BYTES = 4 * 1024 * 1024   # tile target in f32-equivalent bytes
_MIN_GRID_STEPS = 8                        # keep the HBM stream pipelined
_VMEM_CAP_BYTES = 32 * 1024 * 1024         # safe on v5e/v6e (128 MiB) and v7x (64 MiB)
_DEFAULT_MIN_PALLAS_ELEMS = 256 * 1024     # below this, XLA-fused jnp wins


def _round_up(a: int, b: int) -> int:
    return ((a + b - 1) // b) * b


def _mish_kernel(x_ref, o_ref):
    x = x_ref[...].astype(jnp.float32)
    # tanh(softplus(x)) == (e^2 + 2e) / (e^2 + 2e + 2), e = exp(x).
    # Clamp: for x >= 20 the ratio is exactly 1.0 in f32, so the clamp is
    # exact while preventing exp overflow; for very negative x, e underflows
    # to 0 and the result is 0 (correct to f32).
    e = jnp.exp(jnp.minimum(x, 20.0))
    num = e * (e + 2.0)                     # e^2 + 2e  (>= 0)
    den = num + 2.0                         # >= 2, never zero
    inv = pl.reciprocal(den, approx=True)   # EUP estimate
    inv = inv * (2.0 - den * inv)           # one Newton step (VPU) -> ~full f32
    # Group so the <=1 ratio multiplies x last (no spurious overflow).
    o_ref[...] = (x * (num * inv)).astype(o_ref.dtype)


def _mish_jnp(x: jax.Array) -> jax.Array:
    """Plain fused-XLA Mish; used as reference, small-input and tail path."""
    xf = x.astype(jnp.float32)
    sp = jnp.maximum(xf, 0.0) + jnp.log1p(jnp.exp(-jnp.abs(xf)))
    return (xf * jnp.tanh(sp)).astype(x.dtype)


def _mish_pallas_slab(slab: jax.Array, row_unit: int, itemsize: int) -> jax.Array:
    """Run the Mish kernel on a lane-dense (rows, 128) slab; rows % row_unit == 0."""
    rows = slab.shape[0]

    # Tile target in f32-equivalent elements (kernel upcasts to f32), so bf16
    # inputs don't blow the f32 temp budget on v7x's smaller VMEM.
    target_rows = max(row_unit, _TARGET_TILE_F32_BYTES // (_LANES * 4))
    target_rows -= target_rows % row_unit
    # Grid-step floor: don't let a 4-8 MiB input collapse to grid=(1,)/(2,).
    step_floor_rows = _round_up(pl.cdiv(rows, _MIN_GRID_STEPS), row_unit)
    tile_rows = min(target_rows, step_floor_rows)
    tile_rows = max(tile_rows, row_unit)
    tile_rows = min(tile_rows, rows)
    grid = (pl.cdiv(rows, tile_rows),)

    # Live budget: double-buffered in + out tiles plus ~2 f32 temp tiles.
    tile_elems = tile_rows * _LANES
    live_bytes = 2 * 2 * tile_elems * itemsize + 2 * tile_elems * 4
    vmem_limit = min(_VMEM_CAP_BYTES, max(4 * 1024 * 1024, live_bytes))

    return pl.pallas_call(
        _mish_kernel,
        out_shape=jax.ShapeDtypeStruct((rows, _LANES), slab.dtype),
        grid_spec=pltpu.PrefetchScalarGridSpec(
            num_scalar_prefetch=0,
            grid=grid,
            in_specs=[pl.BlockSpec((tile_rows, _LANES), lambda i: (i, 0))],
            out_specs=pl.BlockSpec((tile_rows, _LANES), lambda i: (i, 0)),
        ),
        compiler_params=pltpu.CompilerParams(
            dimension_semantics=("parallel",),
            vmem_limit_bytes=vmem_limit,
        ),
    )(slab)


def mish(x: jax.Array, *, min_pallas_elems: int = _DEFAULT_MIN_PALLAS_ELEMS) -> jax.Array:
    """Elementwise Mish (x * tanh(softplus(x))) via a Pallas TPU kernel."""
    orig_shape = x.shape
    orig_dtype = x.dtype
    itemsize = jnp.dtype(orig_dtype).itemsize

    flat = x.reshape(-1)
    n = flat.shape[0]

    # Small-input fallback: launch/grid overhead dominates for tiny tensors.
    if n < max(min_pallas_elems, 1):
        return _mish_jnp(flat).reshape(orig_shape)

    # Native sublane packing: 8 rows for 4-byte, 16 for 2-byte, 32 for 1-byte dtypes.
    row_unit = max(8, 32 // itemsize)
    pad_unit = row_unit * _LANES

    n_aligned = n - (n % pad_unit)
    if n_aligned == 0:
        # Less than one full sublane tile: no point launching a kernel.
        return _mish_jnp(flat).reshape(orig_shape)

    # Pallas on the aligned prefix (zero-offset slice -> lane-dense slab) ...
    rows = n_aligned // _LANES
    slab = flat[:n_aligned].reshape(rows, _LANES)
    head_out = _mish_pallas_slab(slab, row_unit, itemsize).reshape(-1)

    if n_aligned == n:
        return head_out.reshape(orig_shape)

    # ... and plain jnp on the (< pad_unit element) tail, then stitch.
    tail_out = _mish_jnp(flat[n_aligned:])
    return jnp.concatenate([head_out, tail_out]).reshape(orig_shape)


if __name__ == "__main__":
    key = jax.random.PRNGKey(0)
    k0, k1, k2 = jax.random.split(key, 3)

    # 1) Aligned NCHW activation, Pallas path forced (grid has 2 steps of 8x128).
    x = jax.random.normal(k0, (2, 4, 16, 16), dtype=jnp.float32) * 3.0
    y = mish(x, min_pallas_elems=0)
    jax.block_until_ready(y)
    assert y.shape == x.shape and y.dtype == x.dtype
    assert jnp.allclose(y, _mish_jnp(x), atol=1e-5, rtol=5e-5), "Mish kernel mismatch (aligned)"

    # 2) Misaligned element count: Pallas on the aligned prefix + jnp tail.
    x2 = jax.random.normal(k1, (3, 5, 7, 11), dtype=jnp.float32) * 3.0
    y2 = mish(x2, min_pallas_elems=0)
    jax.block_until_ready(y2)
    assert y2.shape == x2.shape and y2.dtype == x2.dtype
    assert jnp.allclose(y2, _mish_jnp(x2), atol=1e-5, rtol=5e-5), "Mish kernel mismatch (prefix+tail)"

    # 3) bf16 input through the Pallas path (f32 internal math, bf16 out).
    x3 = (jax.random.normal(k2, (2, 4, 16, 16), dtype=jnp.float32) * 3.0).astype(jnp.bfloat16)
    y3 = mish(x3, min_pallas_elems=0)
    jax.block_until_ready(y3)
    assert y3.dtype == jnp.bfloat16
    assert jnp.allclose(y3.astype(jnp.float32), _mish_jnp(x3).astype(jnp.float32),
                        atol=2e-2, rtol=2e-2), "Mish kernel mismatch (bf16)"

    # 4) Default small-input fallback path (pure jnp) stays correct.
    y4 = mish(x)
    jax.block_until_ready(y4)
    assert jnp.allclose(y4, _mish_jnp(x), atol=1e-6, rtol=1e-6), "Mish fallback mismatch"

    print("KERNEL_OK")
</pallas_src>

<mosaic_0001>
module attributes {stable_mosaic.version = 11 : i64} {
  func.func @_mish_kernel(%arg0: i32, %arg1: memref<8x128xf32, #tpu.memory_space<vmem>>, %arg2: memref<8x128xf32, #tpu.memory_space<vmem>>) attributes {dimension_semantics = [#tpu.dimension_semantics<parallel>], iteration_bounds = array<i64: 2>, scalar_prefetch = 0 : i64, scratch_operands = 0 : i64, tpu.core_type = #tpu.core_type<tc>, window_params = [{transform_indices = @transform_0, window_bounds = array<i64: 8, 128>}, {transform_indices = @transform_1, window_bounds = array<i64: 8, 128>}]} {
    %c0 = arith.constant 0 : index
    %c0_0 = arith.constant 0 : index
    %0 = vector.load %arg1[%c0, %c0_0] : memref<8x128xf32, #tpu.memory_space<vmem>>, vector<8x128xf32>
    %cst = arith.constant 2.000000e+01 : f32
    %1 = vector.broadcast %cst : f32 to vector<8x128xf32>
    %2 = arith.minimumf %0, %1 : vector<8x128xf32>
    %3 = math.exp %2 : vector<8x128xf32>
    %cst_1 = arith.constant 2.000000e+00 : f32
    %4 = vector.broadcast %cst_1 : f32 to vector<8x128xf32>
    %5 = arith.addf %3, %4 : vector<8x128xf32>
    %6 = arith.mulf %3, %5 : vector<8x128xf32>
    %cst_2 = arith.constant 2.000000e+00 : f32
    %7 = vector.broadcast %cst_2 : f32 to vector<8x128xf32>
    %8 = arith.addf %6, %7 : vector<8x128xf32>
    %9 = tpu.reciprocal %8 {approx = true} : vector<8x128xf32> -> vector<8x128xf32>
    %10 = arith.mulf %8, %9 : vector<8x128xf32>
    %cst_3 = arith.constant 2.000000e+00 : f32
    %11 = vector.broadcast %cst_3 : f32 to vector<8x128xf32>
    %12 = arith.subf %11, %10 : vector<8x128xf32>
    %13 = arith.mulf %9, %12 : vector<8x128xf32>
    %14 = arith.mulf %6, %13 : vector<8x128xf32>
    %15 = arith.mulf %0, %14 : vector<8x128xf32>
    %c0_4 = arith.constant 0 : index
    %c0_5 = arith.constant 0 : index
    %16 = vector.load %arg2[%c0_4, %c0_5] : memref<8x128xf32, #tpu.memory_space<vmem>>, vector<8x128xf32>
    tpu.vector_store %arg2[%c0_4, %c0_5], %15 {strides = array<i32>} : memref<8x128xf32, #tpu.memory_space<vmem>>, vector<8x128xf32>,
    return
  }
  func.func @transform_0(%arg0: i32) -> (i32, i32) {
    %c0_i32 = arith.constant 0 : i32
    %c0_i32_0 = arith.constant 0 : i32
    return %arg0, %c0_i32 : i32, i32
  }
  func.func @transform_1(%arg0: i32) -> (i32, i32) {
    %c0_i32 = arith.constant 0 : i32
    %c0_i32_0 = arith.constant 0 : i32
    return %arg0, %c0_i32 : i32, i32
  }
}

</mosaic_0001>

<bundles_post_ra>
// kernel: tpu_custom_call.1
= control target key start
LH: loop header
LB: loop body
LE: loop exit
PB: predicated region body
PF: predicated region fallthrough
CT: control target
= control target key end

     0   :  { %6 = vsyncpa [#allocation3], 0  ;;  %s539_s0 = inlined_call_operand.hbm [shape: f32[16,128], index: 0, kind: input, shape index: {}]   ;;  %s540_s1 = inlined_call_operand.hbm [shape: f32[16,128], index: 1, kind: output, shape index: {}]  }
   0x1   :  { %8 = vsyncpa [#allocation3 + $0x1], 0 }
   0x2   :  { %9 = vsyncpa [#allocation4], 0 }
   0x3   :  { %11 = vsyncpa [#allocation4 + $0x1], 0  ;;  %s398_s6 = smov 0   ;;  %s400_s7 = smov 0  }
   0x4   :  { %s402_s8 = smov 0   ;;  %s404_s9 = smov 0  }
   0x5 LB: > { %s419_s10 = sadd.s32 4294967295, %s384_s9   ;;  %s230_s11 = sadd.s32 4294967294, %s384_s9   ;;  %s384_s9 = sphi %s404_s9, %s557_s9   ;;  %s380_s8 = sphi %s402_s8, %s556_s8   ;;  %s376_s7 = sphi %s400_s7, %s555_s7   ;;  %s372_s6 = sphi %s398_s6, %s554_s6  }
   0x6   : > { %s423_s12 = sadd.s32 1, %s384_s9   ;;  %s24_s13 = sadd.s32 1, %s380_s8 }
   0x7   : > { %s21_s14 = ssub.s32 %s384_s9, %s423_s12  ;;  %p31_p0 = scmp.ne.s32.totalorder %s380_s8, %s376_s7 }
   0x8   : > { %p22_p1 = scmp.eq.s32.totalorder %s21_s14, 0  ;;  %p32_p2 = scmp.eq.s32.totalorder %s384_s9, 0 }
   0x9   : > { %p37_p3 = scmp.ne.s32.totalorder %s376_s7, %s372_s6  ;;  %p38_p4 = scmp.eq.s32.totalorder %s419_s10, 0 }
   0xa   : > { %s435_s15 = scalar_select %p22_p1, %s380_s8, %s24_s13  }
   0xb   : > { %p437_p5 = por %p32_p2, %p31_p0  ;;  %p441_p6 = por %p38_p4, %p37_p3 }
   0xc   : > { %p61_p7 = scmp.eq.s32.totalorder %s419_s10, 1  ;;  %p67_p8 = scmp.eq.s32.totalorder %s230_s11, 1 }
   0xd   : > { %s544_s17 = scalar_select %p441_p6, 1, 0 }
   0xe   : > { %p254_p10 = scmp.lt.s32.totalorder %s384_s9, 2  ;;  %p448_p11 = por %p61_p7, %p31_p0 }
   0xf   : > { %p452_p12 = por %p67_p8, %p37_p3  ;;  %s87_s20 = sand.u32 1, %s380_s8  }
  0x10   : > { %s545_s18 = scalar_select %p448_p11, 1, 0 }
  0x11   : > { %s546_s19 = scalar_select %p452_p12, 1, 0 }
  0x12   : > { %s234_s21 = sshll.u32 %s384_s9, 7  ;;  %s233_s22 = sshll.u32 %s87_s20, 3 }
  0x13   : > { %s461_s25 = scalar_lea.hbm %s539_s0, %s234_s21  ;;  %s91_s26 = scalar_lea.vmem [#allocation2], %s233_s22 }
  0x14   : > { %s98_s27 = sshll.u32 %s91_s26, 4  ;;  %p465_p13 = pnand %p254_p10, %p437_p5  ;;  %s469_s27 = int_to_ptr.vmem [resolvable:$true] %s98_s27 }
  0x15   : > { %s88_s29 = scalar_lea.sflag [#allocation3], %s87_s20  ;;  %s292_s30 = scalar_lea.hbm %s461_s25, 128 }
  0x16   : > { %p293_p2 = scmp.ne.s32.totalorder %s461_s25, %s292_s30  ;;  %p294_p3 = pneg %p465_p13 }
  0x17   : > { %s297_s4 = scalar_lea.hbm %s539_s0, 256  ;;  %p298_p5 = scmp.lt.s32.totalorder %s461_s25, %s539_s0 }
  0x18   : > { %p295_p4 = pnand %p294_p3, %p293_p2  ;;  %p299_p8 = scmp.lt.s32.totalorder %s297_s4, %s292_s30 }
  0x1a   : > { %p296_p7 = pneg %p295_p4  ;;  %p300_p10 = por %p299_p8, %p298_p5 }
  0x1c   : > { %p301_p9 = pnand %p300_p10, %p296_p7 }
  0x1e   : > { %304 = shalt.err (!%p301_p9)
}
  0x1f   : > { %s305_s13 = scalar_lea.vmem %s469_s27, 128  ;;  %s386_s14 = smov [#allocation2]  }
  0x20   : > { %p306_p0 = scmp.ne.s32.totalorder %s469_s27, %s305_s13  ;;  %s310_s16 = sshll.u32 %s386_s14, 4  ;;  %s311_s16 = int_to_ptr.vmem [resolvable:$false] %s310_s16 }
  0x21   : > { %s312_s20 = scalar_lea.vmem %s311_s16, 256  ;;  %p313_p4 = scmp.lt.s32.totalorder %s469_s27, %s311_s16 }
  0x22   : > { %p308_p1 = pnand %p306_p0, %p294_p3  ;;  %p314_p12 = scmp.lt.s32.totalorder %s312_s20, %s305_s13 }
  0x24   : > { %p309_p2 = pneg %p308_p1  ;;  %p315_p11 = por %p314_p12, %p313_p4 }
  0x26   : > { %p316_p6 = pnand %p315_p11, %p309_p2 }
  0x28   : > { %319 = shalt.err (!%p316_p6)
}
  0x29   : > { %249 = dma.hbm_to_vmem [thread:$0]  (!%p465_p13), %s461_s25, 128, %s469_s27, %s88_s29  }
  0x2a   : > { %p548_p9 = scmp.lt.s32.totalorder %s384_s9, 3  ;;  %p549_p7 = scmp.ge.s32.totalorder %s384_s9, 1 }
  0x2c   : > { %p104_p0 = pnand %p549_p7, %p548_p9 }
  0x2d   : > { %s496_s21 = sand.u32 (!%p104_p0), 1, %s376_s7   ;;  %p550_p6 = scmp.ne.s32.totalorder (!%p104_p0), %s544_s17, 0 }
  0x2e   : > { %107 = sbr.rel (%p104_p0) target bundleno = 114 (0x72), region = 24  ;;  %s236_s22 = sshll.u32 (!%p104_p0), %s496_s21, 3 }
  0x2f   : > { %s110_s23 = scalar_lea.sflag (!%p104_p0), [#allocation3], %s496_s21  ;;  %s113_s24 = scalar_lea.vmem (!%p104_p0), [#allocation2], %s236_s22 }
  0x33   : > { %363 = dma.done.wait (%p550_p6), %s110_s23, 128  }
  0x34   : > { %365 = vsyncadd (%p550_p6), %s110_s23, 4294967168  ;;  %v132_v0 = vld [vmem:[%s113_s24] sm:$0xff]  ;;  %s131_s25 = scalar_lea.vmem [#allocation5], %s236_s22  ;;  %s239_s17 = sshll.u32 %s419_s10, 7 }
  0x35   : > { %v133_v1 = vmin.f32 %v132_v0, 20.0  ;;  %s160_s26 = sshll.u32 %s131_s25, 4  ;;  %s158_s29 = scalar_lea.hbm %s540_s1, %s239_s17  ;;  %s161_s26 = int_to_ptr.vmem [resolvable:$true] %s160_s26 }
  0x36   : > { %s147_s30 = scalar_lea.sflag [#allocation4], %s496_s21  ;;  %s320_s2 = scalar_lea.vmem %s161_s26, 128 }
  0x37   : > { %v134_v2 = vmul.f32 1.442695, %v133_v1  ;;  %p321_p11 = scmp.ne.s32.totalorder %s161_s26, %s320_s2  ;;  %p551_p12 = scmp.ne.s32.totalorder %s545_s18, 0 }
  0x38   : > { %s387_s3 = smov [#allocation5]  }
  0x39   : > { %288 = vpow2.f32 %v134_v2  ;;  %p322_p13 = pnand %p321_p11, %p551_p12  ;;  %s324_s4 = sshll.u32 %s387_s3, 4  ;;  %s325_s4 = int_to_ptr.vmem [resolvable:$false] %s324_s4 }
  0x3a   : > { %s326_s5 = scalar_lea.vmem %s325_s4, 256  ;;  %p327_p3 = scmp.lt.s32.totalorder %s161_s26, %s325_s4 }
  0x3b   : > { %p323_p1 = pneg %p322_p13  ;;  %p328_p5 = scmp.lt.s32.totalorder %s326_s5, %s320_s2 }
  0x3d   : > { %p329_p8 = por %p328_p5, %p327_p3 }
  0x3f   : > { %p330_p10 = pnand %p329_p8, %p323_p1 }
  0x46   : > { %v289_v3 = vpop.eup %288 }
  0x47   : > { %v136_v4 = vadd.f32 2.0, %v289_v3 }
  0x49   : > { %v137_v5 = vmul.f32 %v289_v3, %v136_v4 }
  0x4b   : > { %v138_v6 = vadd.f32 2.0, %v137_v5 }
  0x4d   : > { %290 = vrcp.f32 %v138_v6 }
  0x5a   : > { %v291_v7 = vpop.eup %290 }
  0x5b   : > { %v140_v8 = vmul.f32 %v291_v7, %v138_v6 }
  0x5d   : > { %v141_v9 = vsub.f32 2.0, %v140_v8 }
  0x5f   : > { %v142_v10 = vmul.f32 %v291_v7, %v141_v9 }
  0x61   : > { %v143_v11 = vmul.f32 %v142_v10, %v137_v5 }
  0x63   : > { %v144_v12 = vmul.f32 %v143_v11, %v132_v0 }
  0x65   : > { %145 = vst [vmem:[%s131_s25] sm:$0xff] %v144_v12 }
  0x66   : > { %333 = shalt.err (!%p330_p10)
}
  0x67   : > { %s334_s10 = scalar_lea.hbm %s158_s29, 128  ;;  %s338_s14 = scalar_lea.hbm %s540_s1, 256 }
  0x68   : > { %p335_p2 = scmp.ne.s32.totalorder %s158_s29, %s334_s10  ;;  %p339_p7 = scmp.lt.s32.totalorder %s158_s29, %s540_s1 }
  0x69   : > { %p340_p0 = scmp.lt.s32.totalorder %s338_s14, %s334_s10 }
  0x6a   : > { %p336_p4 = pnand %p335_p2, %p551_p12 }
  0x6b   : > { %p341_p6 = por %p340_p0, %p339_p7 }
  0x6c   : > { %p337_p9 = pneg %p336_p4 }
  0x6e   : > { %p342_p11 = pnand %p341_p6, %p337_p9 }
  0x70   : > { %345 = shalt.err (!%p342_p11)
}
  0x71   : > { %244 = dma.vmem_to_hbm [thread:$0]  (%p551_p12), %s161_s26, 128, %s158_s29, %s147_s30  }
  0x72 PF: > { %s172_s21 = sand.u32 1, %s372_s6   ;;  %p552_p13 = scmp.ne.s32.totalorder %s546_s19, 0 }
  0x73   : > { %p553_p1 = scmp.ge.s32.totalorder %s384_s9, 2  ;;  %s173_s22 = scalar_lea.sflag [#allocation4], %s172_s21 }
  0x75   : > { %p251_p3 = pnand %p553_p1, %p552_p13 }
  0x77   : > { %p252_p5 = pneg %p251_p3 }
  0x79   : > { %367 = dma.done.wait (%p252_p5), %s173_s22, 128  }
  0x7a   : > { %369 = vsyncadd (%p252_p5), %s173_s22, 4294967168  ;;  %p14_p8 = scmp.ge.s32.totalorder %s423_s12, 4   ;;  %s554_s6 = smov %s376_s7 }
  0x7b   : > { %s555_s7 = smov %s380_s8  ;;  %s556_s8 = smov %s435_s15 }
  0x7c   : > { %s557_s9 = smov %s423_s12  ;;  %16 = sbr.rel (!%p14_p8) target bundleno = 5 (0x5), region = 69 }
  0x81   :  { %178 = vsyncpa [#allocation3], 1 }
  0x82   :  { %180 = vsyncpa [#allocation3 + $0x1], 1 }
  0x83   :  { %181 = vsyncpa [#allocation4], 1 }
  0x84   :  { %183 = vsyncpa [#allocation4 + $0x1], 1 }

</bundles_post_ra>
